<compile_context>
chip_gen: v5e
topology: v5e:2x2
jax: 0.10.0
libtpu: 0.0.40
codegen_flags: <defaults>
</compile_context>

<pallas_src>
import functools

import jax
import jax.numpy as jnp
from jax import lax
from jax.experimental import pallas as pl
from jax.experimental.pallas import tpu as pltpu

EPS = 1e-5          # torch.nn.BatchNorm2d default eps
LANE = 128


def _round_up(x, m):
    return ((x + m - 1) // m) * m


def _vmem_limit_bytes():
    """Generation-aware VMEM budget: ~72% of per-core VMEM, clamped to sane range."""
    cap = 64 * 1024 * 1024                      # conservative default (v7x per-TC)
    try:
        info = pltpu.get_tpu_info()
        cap = int(getattr(info, "vmem_capacity_bytes", cap)) or cap
    except Exception:
        pass
    # ~46 MiB on v7x (64 MiB physical), ~92 MiB on v5e/v6e (128 MiB physical)
    return max(32 * 1024 * 1024, min(int(cap * 0.72), 100 * 1024 * 1024))


VMEM_LIMIT = _vmem_limit_bytes()


def _pad2d(a, rows, cols):
    r, c = a.shape
    return jnp.pad(a, ((0, rows - r), (0, cols - c)))


def _make_gb(gamma, beta, coutp):
    """Pack gamma (row 0) / beta (row 1) into a sublane-aligned (8, Coutp) slab."""
    gb = jnp.zeros((8, coutp), jnp.float32)
    gb = gb.at[0, :gamma.shape[0]].set(gamma)
    gb = gb.at[1, :beta.shape[0]].set(beta)
    return gb


# ======================================================================
# Fused single-pass kernel: conv matmul + batch stats + BN (+res) (+ReLU)
# ======================================================================
def _conv_bn_fused_kernel(a_ref, w_ref, gb_ref, *rest,
                          m_actual, tm, relu, has_residual):
    if has_residual:
        res_ref, o_ref, y_slab, sum_ref, ssq_ref = rest
    else:
        o_ref, y_slab, sum_ref, ssq_ref = rest

    i = pl.program_id(1)                     # M axis (innermost, "arbitrary")

    @pl.when(i == 0)
    def _init():
        sum_ref[...] = jnp.zeros_like(sum_ref)
        ssq_ref[...] = jnp.zeros_like(ssq_ref)

    # bf16 MXU matmul with f32 accumulation.
    y = jnp.dot(a_ref[...], w_ref[...], preferred_element_type=jnp.float32)

    # Keep the f32 conv output resident in VMEM scratch (no HBM round trip).
    row0 = pl.multiple_of(i * tm, tm)
    y_slab[pl.ds(row0, tm), :] = y

    # Per-channel batch statistics (padded rows are exactly zero -> contribute 0).
    sum_ref[...] += jnp.sum(y, axis=0, keepdims=True)
    ssq_ref[...] += jnp.sum(y * y, axis=0, keepdims=True)

    @pl.when(i == pl.num_programs(1) - 1)
    def _finalize():
        inv_m = jnp.float32(1.0 / m_actual)
        mean = sum_ref[...] * inv_m
        var = jnp.maximum(ssq_ref[...] * inv_m - mean * mean, 0.0)
        scale = gb_ref[0:1, :] * lax.rsqrt(var + EPS)    # gamma * rsqrt(var+eps)
        shift = gb_ref[1:2, :] - mean * scale            # beta  - mean*scale
        out = y_slab[...] * scale + shift
        if has_residual:
            out = out + res_ref[...].astype(jnp.float32)
        if relu:
            out = jnp.maximum(out, 0.0)
        o_ref[...] = out.astype(o_ref.dtype)


def conv_bn_fused(patches, w, gb, *, m_actual, tm, tn, relu, out_dtype,
                  residual=None):
    """patches: [Mp, Kp] bf16, w: [Kp, Coutp] bf16, gb: [8, Coutp] f32,
    residual (optional, pre-normalized): [Mp, Coutp] bf16.
    Returns BN(patches @ w) (+residual) (+ReLU) as [Mp, Coutp] out_dtype."""
    mp, kp = patches.shape
    coutp = w.shape[1]
    nm, ncs = mp // tm, coutp // tn
    has_res = residual is not None
    kernel = functools.partial(_conv_bn_fused_kernel, m_actual=float(m_actual),
                               tm=tm, relu=relu, has_residual=has_res)

    inputs = [patches, w, gb]
    in_specs = [
        pl.BlockSpec((tm, kp), lambda c, i: (i, 0)),     # streamed M tiles
        pl.BlockSpec((kp, tn), lambda c, i: (0, c)),     # weight slab (resident)
        pl.BlockSpec((8, tn), lambda c, i: (0, c)),      # gamma/beta
    ]
    if has_res:
        inputs.append(residual)
        in_specs.append(pl.BlockSpec((mp, tn), lambda c, i: (0, c)))  # resident

    return pl.pallas_call(
        kernel,
        out_shape=jax.ShapeDtypeStruct((mp, coutp), out_dtype),
        grid_spec=pltpu.PrefetchScalarGridSpec(
            num_scalar_prefetch=0,
            grid=(ncs, nm),
            in_specs=in_specs,
            # Output stays VMEM-resident across the M sweep; written at finalize.
            out_specs=pl.BlockSpec((mp, tn), lambda c, i: (0, c)),
            scratch_shapes=[pltpu.VMEM((mp, tn), jnp.float32),   # conv-out slab
                            pltpu.VMEM((1, tn), jnp.float32),    # sum
                            pltpu.VMEM((1, tn), jnp.float32)]),  # sum of squares
        compiler_params=pltpu.CompilerParams(
            # Cout slabs are independent -> parallel (2 TCs on v7x);
            # M carries the stats accumulator -> arbitrary (sequential).
            dimension_semantics=("parallel", "arbitrary"),
            vmem_limit_bytes=VMEM_LIMIT),
    )(*inputs)


# ======================================================================
# Two-pass fallback (large slabs): conv_stats (matmul + stats) + bn_apply
# ======================================================================
def _matmul_stats_kernel(a_ref, w_ref, gb_ref, y_ref, ss_ref, sum_ref, ssq_ref,
                         *, m_actual):
    i = pl.program_id(1)

    @pl.when(i == 0)
    def _init():
        sum_ref[...] = jnp.zeros_like(sum_ref)
        ssq_ref[...] = jnp.zeros_like(ssq_ref)
        ss_ref[...] = jnp.zeros_like(ss_ref)

    y = jnp.dot(a_ref[...], w_ref[...], preferred_element_type=jnp.float32)
    y_ref[...] = y.astype(y_ref.dtype)                  # stream conv out as bf16
    sum_ref[...] += jnp.sum(y, axis=0, keepdims=True)
    ssq_ref[...] += jnp.sum(y * y, axis=0, keepdims=True)

    @pl.when(i == pl.num_programs(1) - 1)
    def _finalize():
        inv_m = jnp.float32(1.0 / m_actual)
        mean = sum_ref[...] * inv_m
        var = jnp.maximum(ssq_ref[...] * inv_m - mean * mean, 0.0)
        scale = gb_ref[0:1, :] * lax.rsqrt(var + EPS)
        ss_ref[0:1, :] = scale                           # direct row stores
        ss_ref[1:2, :] = gb_ref[1:2, :] - mean * scale


def conv_stats(patches, w, gb, *, m_actual, tm, tn):
    mp, kp = patches.shape
    coutp = w.shape[1]
    nm, ncs = mp // tm, coutp // tn
    kernel = functools.partial(_matmul_stats_kernel, m_actual=float(m_actual))
    return pl.pallas_call(
        kernel,
        out_shape=(jax.ShapeDtypeStruct((mp, coutp), jnp.bfloat16),
                   jax.ShapeDtypeStruct((8, coutp), jnp.float32)),
        grid_spec=pltpu.PrefetchScalarGridSpec(
            num_scalar_prefetch=0,
            grid=(ncs, nm),
            in_specs=[pl.BlockSpec((tm, kp), lambda c, i: (i, 0)),
                      pl.BlockSpec((kp, tn), lambda c, i: (0, c)),
                      pl.BlockSpec((8, tn), lambda c, i: (0, c))],
            out_specs=(pl.BlockSpec((tm, tn), lambda c, i: (i, c)),
                       pl.BlockSpec((8, tn), lambda c, i: (0, c))),
            scratch_shapes=[pltpu.VMEM((1, tn), jnp.float32),
                            pltpu.VMEM((1, tn), jnp.float32)]),
        compiler_params=pltpu.CompilerParams(
            dimension_semantics=("parallel", "arbitrary"),
            vmem_limit_bytes=VMEM_LIMIT),
    )(patches, w, gb)


def _bn_apply_kernel(y_ref, ss_ref, *rest, relu, has_residual):
    if has_residual:
        res_ref, o_ref = rest
    else:
        (o_ref,) = rest
    y = y_ref[...].astype(jnp.float32) * ss_ref[0:1, :] + ss_ref[1:2, :]
    if has_residual:
        y = y + res_ref[...].astype(jnp.float32)
    if relu:
        y = jnp.maximum(y, 0.0)
    o_ref[...] = y.astype(o_ref.dtype)


def bn_apply(y, ss, *, tm, relu, out_dtype, residual=None):
    mp, coutp = y.shape
    nm = mp // tm
    has_res = residual is not None
    kernel = functools.partial(_bn_apply_kernel, relu=relu, has_residual=has_res)
    row_spec = pl.BlockSpec((tm, coutp), lambda i: (i, 0))
    inputs, in_specs = [y, ss], [row_spec, pl.BlockSpec((8, coutp), lambda i: (0, 0))]
    if has_res:
        inputs.append(residual)
        in_specs.append(row_spec)
    return pl.pallas_call(
        kernel,
        out_shape=jax.ShapeDtypeStruct((mp, coutp), out_dtype),
        grid_spec=pltpu.PrefetchScalarGridSpec(
            num_scalar_prefetch=0,
            grid=(nm,),
            in_specs=in_specs,
            out_specs=pl.BlockSpec((tm, coutp), lambda i: (i, 0))),
        compiler_params=pltpu.CompilerParams(
            dimension_semantics=("parallel",),
            vmem_limit_bytes=VMEM_LIMIT),
    )(*inputs)


# ------------------------------ im2col glue ---------------------------------
def im2col(x_nhwc, k, s):
    """kxk patches, stride s, pad (k-1)//2 -> [N*Ho*Wo, k*k*C] (same dtype as x)."""
    N, H, W, C = x_nhwc.shape
    p = (k - 1) // 2
    xp = jnp.pad(x_nhwc, ((0, 0), (p, p), (p, p), (0, 0)))
    Ho = (H + 2 * p - k) // s + 1
    Wo = (W + 2 * p - k) // s + 1
    cols = []
    for dy in range(k):
        for dx in range(k):
            cols.append(
                xp[:, dy:dy + s * (Ho - 1) + 1:s, dx:dx + s * (Wo - 1) + 1:s, :])
    patches = jnp.stack(cols, axis=3)                 # [N, Ho, Wo, k*k, C]
    return patches.reshape(N * Ho * Wo, k * k * C), (N, Ho, Wo)


def torch_weight_to_matmul(w_oihw):
    """[Cout, Cin, k, k] -> [k*k*Cin, Cout], matching im2col flatten order."""
    cout, cin, k, _ = w_oihw.shape
    return jnp.transpose(w_oihw, (2, 3, 1, 0)).reshape(k * k * cin, cout)


# --------------------------- Residual block ----------------------------------
class ResidualPallas:
    expansion = 1

    def __init__(self, key, in_channels, out_channels, s=1, *,
                 max_tm=1024, force_two_pass=False):
        self.s = s
        self.max_tm = max(16, max_tm)
        self.force_two_pass = force_two_pass
        self.in_channels = in_channels
        self.out_channels = out_channels
        self.coutp = _round_up(out_channels, LANE)
        # 256-wide lane slabs fill the 2x256^2 MXU on v6e/v7x for real layer widths.
        self.tn = 256 if (self.coutp % 256 == 0) else LANE
        self.add_m = (s != 1) or (in_channels != self.expansion * out_channels)

        ks = jax.random.split(key, 9)

        def conv_w(k, cout, cin, ksz):
            bound = (cin * ksz * ksz) ** -0.5
            return jax.random.uniform(k, (cout, cin, ksz, ksz), jnp.float32,
                                      minval=-bound, maxval=bound)

        def prep_w(w_oihw):
            wm = torch_weight_to_matmul(w_oihw)                  # [K, Cout] f32
            kp = _round_up(wm.shape[0], LANE)
            return _pad2d(wm, kp, self.coutp).astype(jnp.bfloat16), kp

        # conv1: 3x3 stride s + BN + ReLU
        self.w1_oihw = conv_w(ks[0], out_channels, in_channels, 3)
        self.g1 = 1.0 + 0.1 * jax.random.normal(ks[1], (out_channels,), jnp.float32)
        self.b1 = 0.1 * jax.random.normal(ks[2], (out_channels,), jnp.float32)
        self.w1, self.k1p = prep_w(self.w1_oihw)
        self.gb1 = _make_gb(self.g1, self.b1, self.coutp)

        # conv2: 3x3 stride 1 + BN (Identity activation)
        self.w2_oihw = conv_w(ks[3], out_channels, out_channels, 3)
        self.g2 = 1.0 + 0.1 * jax.random.normal(ks[4], (out_channels,), jnp.float32)
        self.b2 = 0.1 * jax.random.normal(ks[5], (out_channels,), jnp.float32)
        self.w2, self.k2p = prep_w(self.w2_oihw)
        self.gb2 = _make_gb(self.g2, self.b2, self.coutp)

        # conv3 (projection shortcut): 1x1 stride s + BN
        if self.add_m:
            self.w3_oihw = conv_w(ks[6], out_channels, in_channels, 1)
            self.g3 = 1.0 + 0.1 * jax.random.normal(ks[7], (out_channels,), jnp.float32)
            self.b3 = 0.1 * jax.random.normal(ks[8], (out_channels,), jnp.float32)
            self.w3, self.k3p = prep_w(self.w3_oihw)
            self.gb3 = _make_gb(self.g3, self.b3, self.coutp)

    # -------- VMEM-budget-driven tile planning (shared by all three convs) -----
    def _plan(self, M, kp_max):
        budget = int(VMEM_LIMIT * 0.8)
        tn = self.tn
        m_cap = max(_round_up(M, 16), 16)
        cands = [c for c in (1024, 512, 256, 128, 64, 32, 16)
                 if c <= self.max_tm and c <= m_cap] or [16]

        def fused_bytes(tm):
            mp = _round_up(M, tm)
            return (2 * tm * kp_max * 2          # bf16 patch tile, double-buffered
                    + 2 * kp_max * tn * 2        # bf16 weight slab
                    + 2 * 8 * tn * 4             # gamma/beta
                    + mp * tn * 4                # f32 conv-output slab (scratch)
                    + 2 * mp * tn * 2            # resident bf16 output
                    + 2 * mp * tn * 2)           # resident bf16 residual

        def twopass_bytes(tm):
            return (2 * tm * kp_max * 2 + 2 * kp_max * tn * 2 + 2 * 8 * tn * 4
                    + 2 * tm * tn * 2 + 2 * 8 * tn * 4      # conv_stats outputs
                    + 3 * 2 * tm * self.coutp * 2)          # bn_apply streams

        if not self.force_two_pass:
            for tm in cands:
                if fused_bytes(tm) <= budget:
                    return True, tm, _round_up(M, tm)
        for tm in cands:
            if twopass_bytes(tm) <= budget:
                return False, tm, _round_up(M, tm)
        tm = cands[-1]
        return False, tm, _round_up(M, tm)

    def _conv(self, patches_p, w, gb, *, M, tm, relu, residual, use_fused):
        if use_fused:
            return conv_bn_fused(patches_p, w, gb, m_actual=M, tm=tm, tn=self.tn,
                                 relu=relu, out_dtype=jnp.bfloat16,
                                 residual=residual)
        yc, ss = conv_stats(patches_p, w, gb, m_actual=M, tm=tm, tn=self.tn)
        return bn_apply(yc, ss, tm=tm, relu=relu, out_dtype=jnp.bfloat16,
                        residual=residual)

    def __call__(self, x_nchw):
        # bf16 before im2col: the 9x-expanded patch slab is built/streamed in bf16.
        x = jnp.transpose(x_nchw, (0, 2, 3, 1)).astype(jnp.bfloat16)   # NHWC bf16
        cout, coutp = self.out_channels, self.coutp

        p1, (N, Ho, Wo) = im2col(x, 3, self.s)
        M = N * Ho * Wo
        kps = [self.k1p, self.k2p] + ([self.k3p] if self.add_m else [])
        use_fused, tm, Mp = self._plan(M, max(kps))

        # conv1: 3x3 stride s -> BN -> ReLU
        p1p = _pad2d(p1, Mp, self.k1p)
        y1 = self._conv(p1p, self.w1, self.gb1, M=M, tm=tm, relu=True,
                        residual=None, use_fused=use_fused)
        y1_nhwc = y1[:M, :cout].reshape(N, Ho, Wo, cout)

        # shortcut branch (pre-normalized, bf16)
        if self.add_m:
            p3, _ = im2col(x, 1, self.s)
            p3p = _pad2d(p3, Mp, self.k3p)
            res = self._conv(p3p, self.w3, self.gb3, M=M, tm=tm, relu=False,
                             residual=None, use_fused=use_fused)
        else:
            res = _pad2d(x.reshape(M, self.in_channels), Mp, coutp)

        # conv2 + BN2 + residual add + ReLU, fused in a single epilogue
        p2, _ = im2col(y1_nhwc, 3, 1)
        p2p = _pad2d(p2, Mp, self.k2p)
        out = self._conv(p2p, self.w2, self.gb2, M=M, tm=tm, relu=True,
                         residual=res, use_fused=use_fused)

        out_nhwc = out[:M, :cout].astype(jnp.float32).reshape(N, Ho, Wo, cout)
        return jnp.transpose(out_nhwc, (0, 3, 1, 2))                    # NCHW


# ---------------------------- pure-JAX reference -----------------------------
def _ref_conv_bn(x_nchw, w_oihw, gamma, beta, stride, relu):
    k = w_oihw.shape[-1]
    p = (k - 1) // 2
    y = lax.conv_general_dilated(x_nchw, w_oihw, (stride, stride),
                                 padding=[(p, p), (p, p)],
                                 dimension_numbers=("NCHW", "OIHW", "NCHW"))
    mean = y.mean(axis=(0, 2, 3), keepdims=True)
    var = jnp.square(y - mean).mean(axis=(0, 2, 3), keepdims=True)
    y = (y - mean) * lax.rsqrt(var + EPS) * gamma.reshape(1, -1, 1, 1) \
        + beta.reshape(1, -1, 1, 1)
    return jnp.maximum(y, 0.0) if relu else y


def _ref_residual(block, x_nchw):
    y = _ref_conv_bn(x_nchw, block.w1_oihw, block.g1, block.b1, block.s, True)
    y = _ref_conv_bn(y, block.w2_oihw, block.g2, block.b2, 1, False)
    if block.add_m:
        x_nchw = _ref_conv_bn(x_nchw, block.w3_oihw, block.g3, block.b3, block.s, False)
    return jnp.maximum(x_nchw + y, 0.0)


# --------------------------------- main --------------------------------------
if __name__ == "__main__":
    key = jax.random.PRNGKey(0)
    kx, kp1, kp2, kp3 = jax.random.split(key, 4)

    def check(block, x, expect_shape, tag):
        out = jax.block_until_ready(block(x))
        ref = jax.block_until_ready(_ref_residual(block, x))
        assert out.shape == expect_shape, (tag, out.shape)
        err = float(jnp.max(jnp.abs(out - ref)))
        # bf16 MXU operands / bf16 intermediate streams loosen the tolerance
        assert jnp.allclose(out, ref, atol=1e-1, rtol=1e-1), (tag, err)

    # Case 1: projection shortcut (stride 2, channel change), fused single-pass.
    x = jax.random.normal(kx, (2, 4, 16, 16), jnp.float32)
    block = ResidualPallas(kp1, in_channels=4, out_channels=8, s=2)
    check(block, x, (2, 8, 8, 8), "proj/fused")

    # Case 2: identity shortcut, multi-tile M sweep (M=512, tm=128 -> 4 tiles).
    x2 = jax.random.normal(kx, (2, 8, 16, 16), jnp.float32)
    block2 = ResidualPallas(kp2, in_channels=8, out_channels=8, s=1, max_tm=128)
    check(block2, x2, (2, 8, 16, 16), "identity/fused-multitile")

    # Case 3: same shapes, two-pass (conv_stats + bn_apply) fallback path.
    block3 = ResidualPallas(kp3, in_channels=8, out_channels=8, s=1,
                            max_tm=128, force_two_pass=True)
    check(block3, x2, (2, 8, 16, 16), "identity/two-pass")

    print("KERNEL_OK")
</pallas_src>

<mosaic_0001>
module attributes {stable_mosaic.version = 11 : i64} {
  func.func @_conv_bn_fused_kernel(%arg0: i32, %arg1: i32, %arg2: memref<128x128xbf16, #tpu.memory_space<vmem>>, %arg3: memref<128x128xbf16, #tpu.memory_space<vmem>>, %arg4: memref<8x128xf32, #tpu.memory_space<vmem>>, %arg5: memref<128x128xbf16, #tpu.memory_space<vmem>>, %arg6: memref<128x128xf32, #tpu.memory_space<vmem>>, %arg7: memref<1x128xf32, #tpu.memory_space<vmem>>, %arg8: memref<1x128xf32, #tpu.memory_space<vmem>>) attributes {dimension_semantics = [#tpu.dimension_semantics<parallel>, #tpu.dimension_semantics<arbitrary>], iteration_bounds = array<i64: 1, 1>, scalar_prefetch = 0 : i64, scratch_operands = 3 : i64, tpu.core_type = #tpu.core_type<tc>, window_params = [{transform_indices = @transform_0, window_bounds = array<i64: 128, 128>}, {transform_indices = @transform_1, window_bounds = array<i64: 128, 128>}, {transform_indices = @transform_2, window_bounds = array<i64: 8, 128>}, {transform_indices = @transform_3, window_bounds = array<i64: 128, 128>}]} {
    %c0_i32 = arith.constant 0 : i32
    %0 = arith.cmpi eq, %arg1, %c0_i32 : i32
    %1 = arith.extui %0 : i1 to i32
    %c0_i32_0 = arith.constant 0 : i32
    %2 = arith.cmpi ne, %1, %c0_i32_0 : i32
    scf.if %2 {
      %cst_17 = arith.constant 0.000000e+00 : f32
      %24 = vector.broadcast %cst_17 : f32 to vector<1x128xf32>
      %c0_18 = arith.constant 0 : index
      %c0_19 = arith.constant 0 : index
      %25 = vector.load %arg7[%c0_18, %c0_19] : memref<1x128xf32, #tpu.memory_space<vmem>>, vector<1x128xf32>
      tpu.vector_store %arg7[%c0_18, %c0_19], %24 {strides = array<i32>} : memref<1x128xf32, #tpu.memory_space<vmem>>, vector<1x128xf32>,
      %cst_20 = arith.constant 0.000000e+00 : f32
      %26 = vector.broadcast %cst_20 : f32 to vector<1x128xf32>
      %c0_21 = arith.constant 0 : index
      %c0_22 = arith.constant 0 : index
      %27 = vector.load %arg8[%c0_21, %c0_22] : memref<1x128xf32, #tpu.memory_space<vmem>>, vector<1x128xf32>
      tpu.vector_store %arg8[%c0_21, %c0_22], %26 {strides = array<i32>} : memref<1x128xf32, #tpu.memory_space<vmem>>, vector<1x128xf32>,
    } else {
    }
    %c0 = arith.constant 0 : index
    %c0_1 = arith.constant 0 : index
    %3 = vector.load %arg2[%c0, %c0_1] : memref<128x128xbf16, #tpu.memory_space<vmem>>, vector<128x128xbf16>
    %c0_2 = arith.constant 0 : index
    %c0_3 = arith.constant 0 : index
    %4 = vector.load %arg3[%c0_2, %c0_3] : memref<128x128xbf16, #tpu.memory_space<vmem>>, vector<128x128xbf16>
    %cst = arith.constant dense<0.000000e+00> : vector<128x128xf32>
    %5 = tpu.matmul %3, %4, %cst {dimension_numbers = #tpu.dot_dimension_numbers<[1], [0], [0], [1], [0, 0, 1, 1], [], []>} : vector<128x128xbf16>, vector<128x128xbf16>, vector<128x128xf32> -> vector<128x128xf32>
    %c128_i32 = arith.constant 128 : i32
    %6 = arith.muli %arg1, %c128_i32 : i32
    %7 = tpu.assume_multiple %6, 128 : i32
    %8 = arith.index_cast %7 : i32 to index
    %c0_4 = arith.constant 0 : index
    %9 = vector.load %arg6[%8, %c0_4] : memref<128x128xf32, #tpu.memory_space<vmem>>, vector<128x128xf32>
    tpu.vector_store %arg6[%8, %c0_4], %5 {strides = array<i32>} : memref<128x128xf32, #tpu.memory_space<vmem>>, vector<128x128xf32>,
    %c0_5 = arith.constant 0 : index
    %c0_6 = arith.constant 0 : index
    %10 = vector.load %arg7[%c0_5, %c0_6] : memref<1x128xf32, #tpu.memory_space<vmem>>, vector<1x128xf32>
    %cst_7 = arith.constant dense<0.000000e+00> : vector<128xf32>
    %11 = vector.multi_reduction <add>, %5, %cst_7 [0] : vector<128x128xf32> to vector<128xf32>
    %12 = vector.shape_cast %11 : vector<128xf32> to vector<1x128xf32>
    %13 = arith.addf %10, %12 : vector<1x128xf32>
    %c0_8 = arith.constant 0 : index
    %c0_9 = arith.constant 0 : index
    %14 = vector.load %arg7[%c0_8, %c0_9] : memref<1x128xf32, #tpu.memory_space<vmem>>, vector<1x128xf32>
    tpu.vector_store %arg7[%c0_8, %c0_9], %13 {strides = array<i32>} : memref<1x128xf32, #tpu.memory_space<vmem>>, vector<1x128xf32>,
    %c0_10 = arith.constant 0 : index
    %c0_11 = arith.constant 0 : index
    %15 = vector.load %arg8[%c0_10, %c0_11] : memref<1x128xf32, #tpu.memory_space<vmem>>, vector<1x128xf32>
    %16 = arith.mulf %5, %5 : vector<128x128xf32>
    %cst_12 = arith.constant dense<0.000000e+00> : vector<128xf32>
    %17 = vector.multi_reduction <add>, %16, %cst_12 [0] : vector<128x128xf32> to vector<128xf32>
    %18 = vector.shape_cast %17 : vector<128xf32> to vector<1x128xf32>
    %19 = arith.addf %15, %18 : vector<1x128xf32>
    %c0_13 = arith.constant 0 : index
    %c0_14 = arith.constant 0 : index
    %20 = vector.load %arg8[%c0_13, %c0_14] : memref<1x128xf32, #tpu.memory_space<vmem>>, vector<1x128xf32>
    tpu.vector_store %arg8[%c0_13, %c0_14], %19 {strides = array<i32>} : memref<1x128xf32, #tpu.memory_space<vmem>>, vector<1x128xf32>,
    %c0_i32_15 = arith.constant 0 : i32
    %21 = arith.cmpi eq, %arg1, %c0_i32_15 : i32
    %22 = arith.extui %21 : i1 to i32
    %c0_i32_16 = arith.constant 0 : i32
    %23 = arith.cmpi ne, %22, %c0_i32_16 : i32
    scf.if %23 {
      %c0_17 = arith.constant 0 : index
      %c0_18 = arith.constant 0 : index
      %24 = vector.load %arg7[%c0_17, %c0_18] : memref<1x128xf32, #tpu.memory_space<vmem>>, vector<1x128xf32>
      %cst_19 = arith.constant 7.812500e-03 : f32
      %25 = vector.broadcast %cst_19 : f32 to vector<1x128xf32>
      %26 = arith.mulf %24, %25 : vector<1x128xf32>
      %c0_20 = arith.constant 0 : index
      %c0_21 = arith.constant 0 : index
      %27 = vector.load %arg8[%c0_20, %c0_21] : memref<1x128xf32, #tpu.memory_space<vmem>>, vector<1x128xf32>
      %cst_22 = arith.constant 7.812500e-03 : f32
      %28 = vector.broadcast %cst_22 : f32 to vector<1x128xf32>
      %29 = arith.mulf %27, %28 : vector<1x128xf32>
      %30 = arith.mulf %26, %26 : vector<1x128xf32>
      %31 = arith.subf %29, %30 : vector<1x128xf32>
      %cst_23 = arith.constant 0.000000e+00 : f32
      %32 = vector.broadcast %cst_23 : f32 to vector<1x128xf32>
      %33 = arith.maximumf %31, %32 : vector<1x128xf32>
      %c0_24 = arith.constant 0 : index
      %c0_25 = arith.constant 0 : index
      %34 = vector.load %arg4[%c0_24, %c0_25] : memref<8x128xf32, #tpu.memory_space<vmem>>, vector<1x128xf32>
      %cst_26 = arith.constant 9.99999974E-6 : f32
      %35 = vector.broadcast %cst_26 : f32 to vector<1x128xf32>
      %36 = arith.addf %33, %35 : vector<1x128xf32>
      %37 = math.rsqrt %36 : vector<1x128xf32>
      %38 = arith.mulf %34, %37 : vector<1x128xf32>
      %c1 = arith.constant 1 : index
      %c0_27 = arith.constant 0 : index
      %39 = vector.load %arg4[%c1, %c0_27] : memref<8x128xf32, #tpu.memory_space<vmem>>, vector<1x128xf32>
      %40 = arith.mulf %26, %38 : vector<1x128xf32>
      %41 = arith.subf %39, %40 : vector<1x128xf32>
      %c0_28 = arith.constant 0 : index
      %c0_29 = arith.constant 0 : index
      %42 = vector.load %arg6[%c0_28, %c0_29] : memref<128x128xf32, #tpu.memory_space<vmem>>, vector<128x128xf32>
      %43 = vector.broadcast %38 : vector<1x128xf32> to vector<128x128xf32>
      %44 = arith.mulf %42, %43 : vector<128x128xf32>
      %45 = vector.broadcast %41 : vector<1x128xf32> to vector<128x128xf32>
      %46 = arith.addf %44, %45 : vector<128x128xf32>
      %cst_30 = arith.constant 0.000000e+00 : f32
      %47 = vector.broadcast %cst_30 : f32 to vector<128x128xf32>
      %48 = arith.maximumf %46, %47 : vector<128x128xf32>
      %49 = arith.truncf %48 : vector<128x128xf32> to vector<128x128xbf16>
      %c0_31 = arith.constant 0 : index
      %c0_32 = arith.constant 0 : index
      %50 = vector.load %arg5[%c0_31, %c0_32] : memref<128x128xbf16, #tpu.memory_space<vmem>>, vector<128x128xbf16>
      tpu.vector_store %arg5[%c0_31, %c0_32], %49 {strides = array<i32>} : memref<128x128xbf16, #tpu.memory_space<vmem>>, vector<128x128xbf16>,
    } else {
    }
    return
  }
  func.func @transform_0(%arg0: i32, %arg1: i32) -> (i32, i32) {
    %c0_i32 = arith.constant 0 : i32
    %c0_i32_0 = arith.constant 0 : i32
    return %arg1, %c0_i32 : i32, i32
  }
  func.func @transform_1(%arg0: i32, %arg1: i32) -> (i32, i32) {
    %c0_i32 = arith.constant 0 : i32
    %c0_i32_0 = arith.constant 0 : i32
    return %c0_i32, %arg0 : i32, i32
  }
  func.func @transform_2(%arg0: i32, %arg1: i32) -> (i32, i32) {
    %c0_i32 = arith.constant 0 : i32
    %c0_i32_0 = arith.constant 0 : i32
    return %c0_i32, %arg0 : i32, i32
  }
  func.func @transform_3(%arg0: i32, %arg1: i32) -> (i32, i32) {
    %c0_i32 = arith.constant 0 : i32
    %c0_i32_0 = arith.constant 0 : i32
    return %c0_i32, %arg0 : i32, i32
  }
}

</mosaic_0001>

<bundles_post_ra>
// kernel: tpu_custom_call.1
= control target key start
LH: loop header
LB: loop body
LE: loop exit
PB: predicated region body
PF: predicated region fallthrough
CT: control target
= control target key end

     0   :  { %8 = vsyncpa [#allocation6], 0  ;;  %s869_s0 = inlined_call_operand.hbm [shape: bf16[128,128], index: 0, kind: input, shape index: {}]   ;;  %s870_s1 = inlined_call_operand.hbm [shape: bf16[128,128], index: 1, kind: input, shape index: {}]   ;;  %s871_s2 = inlined_call_operand.hbm [shape: f32[8,128], index: 2, kind: input, shape index: {}]   ;;  %s872_s3 = inlined_call_operand.hbm [shape: bf16[128,128], index: 3, kind: output, shape index: {}]  }
   0x1   :  { %9 = vsyncpa [#allocation9], 0 }
   0x2   :  { %10 = vsyncpa [#allocation7], 0  ;;  %s28_s14 = sshll.u32 %s870_s1, 4  ;;  %s731_s15 = smov [#allocation8]   ;;  %s29_s14 = int_to_ptr.hbm [resolvable:$true] %s28_s14 }
   0x3   :  { %s30_s16 = sshll.u32 %s731_s15, 4  ;;  %s15_s19 = sshll.u32 %s869_s0, 4  ;;  %s31_s16 = int_to_ptr.vmem [resolvable:$true] %s30_s16  ;;  %s16_s19 = int_to_ptr.hbm [resolvable:$true] %s15_s19 }
   0x4   :  { %s732_s20 = smov 64   ;;  %s733_s21 = smov 4  }
   0x5   :  { %36 = dma.hbm_to_vmem [thread:$0]  %s29_s14, 1024, %s31_s16, [#allocation9], %s732_s20, %s732_s20, %s733_s21  }
   0x6   :  { %s734_s22 = smov [#allocation5]   ;;  %s42_s1 = sshll.u32 %s871_s2, 4  ;;  %s43_s1 = int_to_ptr.hbm [resolvable:$true] %s42_s1 }
   0x7   :  { %s17_s23 = sshll.u32 %s734_s22, 4  ;;  %s735_s0 = smov [#allocation10]   ;;  %s18_s23 = int_to_ptr.vmem [resolvable:$true] %s17_s23 }
   0x8   :  { %23 = dma.hbm_to_vmem [thread:$0]  %s16_s19, 1024, %s18_s23, [#allocation6], %s732_s20, %s732_s20, %s733_s21  }
   0x9   :  { %s44_s26 = sshll.u32 %s735_s0, 4  ;;  %s45_s26 = int_to_ptr.vmem [resolvable:$true] %s44_s26 }
   0xa   :  { %47 = dma.hbm_to_vmem [thread:$0]  %s43_s1, 128, %s45_s26, [#allocation9]  }
   0xb   :  { %725 = dma.done.wait [#allocation6], 1024  }
   0xc   :  { %726 = vsyncadd [#allocation6], 4294966272 }
   0xd   :  { %727 = dma.done.wait [#allocation9], 1152  }
   0xe   :  { %728 = vsyncadd [#allocation9], 4294966144  ;;  %v548_v0 = vld [vmem:[#allocation8 + $0x38] sm:$0xff]  ;;  %v547_v1 = vld [vmem:[#allocation8 + $0x30] sm:$0xff]  ;;  %v736_v24 = vmov 0.0   ;;  %s737_s2 = smov [#allocation11]  }
   0xf   :  { %194 = vmatpush.bf16.msra.mxu0 %v548_v0  ;;  %596 = vmatpush.bf16.msra.mxu1 %v548_v0  ;;  %v546_v2 = vld [vmem:[#allocation8 + $0x28] sm:$0xff]  ;;  %v545_v3 = vld [vmem:[#allocation8 + $0x20] sm:$0xff]  ;;  %v544_v4 = vld [vmem:[#allocation8 + $0x18] sm:$0xff]  ;;  %64 = vst [vmem:[#allocation3] sm:$0x1] %v736_v24  ;;  %s453_s27 = sshll.u32 %s737_s2, 4  ;;  %s454_s27 = int_to_ptr.vmem [resolvable:$true] %s453_s27 }
  0x10   :  { %597 = vmatpush.bf16.msra.mxu2 %v548_v0  ;;  %598 = vmatpush.bf16.msra.mxu3 %v548_v0  ;;  %v543_v5 = vld [vmem:[#allocation8 + $0x10] sm:$0xff]  ;;  %v542_v6 = vld [vmem:[#allocation8 + $0x8] sm:$0xff]  ;;  %v541_v7 = vld [vmem:[#allocation8] sm:$0xff]  ;;  %65 = vst [vmem:[#allocation4] sm:$0x1] %v736_v24  ;;  %s455_s30 = sshll.u32 %s872_s3, 4  ;;  %s456_s30 = int_to_ptr.hbm [resolvable:$true] %s455_s30 }
  0x11   :  { %v533_v8 = vld [vmem:[#allocation5] sm:$0xff]  ;;  %v535_v9 = vld [vmem:[#allocation5 + $0x10] sm:$0xff]  ;;  %v534_v12 = vld [vmem:[#allocation5 + $0x8] sm:$0xff] }
  0x12   :  { %v537_v10 = vld [vmem:[#allocation5 + $0x20] sm:$0xff]  ;;  %v539_v11 = vld [vmem:[#allocation5 + $0x30] sm:$0xff]  ;;  %v536_v13 = vld [vmem:[#allocation5 + $0x18] sm:$0xff] }
  0x13   :  { %195 = vmatpush.bf16.msra.mxu0 %v547_v1  ;;  %599 = vmatpush.bf16.msra.mxu1 %v547_v1  ;;  %v538_v14 = vld [vmem:[#allocation5 + $0x28] sm:$0xff]  ;;  %v540_v15 = vld [vmem:[#allocation5 + $0x38] sm:$0xff] }
  0x14   :  { %600 = vmatpush.bf16.msra.mxu2 %v547_v1  ;;  %601 = vmatpush.bf16.msra.mxu3 %v547_v1 }
  0x17   :  { %196 = vmatpush.bf16.msra.mxu0 %v546_v2  ;;  %602 = vmatpush.bf16.msra.mxu1 %v546_v2 }
  0x18   :  { %603 = vmatpush.bf16.msra.mxu2 %v546_v2  ;;  %604 = vmatpush.bf16.msra.mxu3 %v546_v2 }
  0x1b   :  { %197 = vmatpush.bf16.msra.mxu0 %v545_v3  ;;  %605 = vmatpush.bf16.msra.mxu1 %v545_v3 }
  0x1c   :  { %606 = vmatpush.bf16.msra.mxu2 %v545_v3  ;;  %607 = vmatpush.bf16.msra.mxu3 %v545_v3 }
  0x1f   :  { %198 = vmatpush.bf16.msra.mxu0 %v544_v4  ;;  %608 = vmatpush.bf16.msra.mxu1 %v544_v4 }
  0x20   :  { %609 = vmatpush.bf16.msra.mxu2 %v544_v4  ;;  %610 = vmatpush.bf16.msra.mxu3 %v544_v4 }
  0x23   :  { %199 = vmatpush.bf16.msra.mxu0 %v543_v5  ;;  %611 = vmatpush.bf16.msra.mxu1 %v543_v5 }
  0x24   :  { %612 = vmatpush.bf16.msra.mxu2 %v543_v5  ;;  %613 = vmatpush.bf16.msra.mxu3 %v543_v5 }
  0x27   :  { %200 = vmatpush.bf16.msra.mxu0 %v542_v6  ;;  %614 = vmatpush.bf16.msra.mxu1 %v542_v6 }
  0x28   :  { %615 = vmatpush.bf16.msra.mxu2 %v542_v6  ;;  %616 = vmatpush.bf16.msra.mxu3 %v542_v6 }
  0x2b   :  { %201 = vmatpush.bf16.msra.mxu0 %v541_v7  ;;  %617 = vmatpush.bf16.msra.mxu1 %v541_v7 }
  0x2c   :  { %618 = vmatpush.bf16.msra.mxu2 %v541_v7  ;;  %619 = vmatpush.bf16.msra.mxu3 %v541_v7 }
  0x2e   :  { %202 = vmatmul.bf16.vlgmr.msra.gmra.mxu0 %v533_v8  ;;  %212 = vmatmul.bf16.vlgmr.msra.gmra.mxu1 %v535_v9 }
  0x2f   :  { %222 = vmatmul.bf16.vlgmr.msra.gmra.mxu2 %v537_v10  ;;  %232 = vmatmul.bf16.vlgmr.msra.gmra.mxu3 %v539_v11 }
  0x3e   :  { %207 = vmatmul.bf16.gmra.mxu0 %v534_v12  ;;  %217 = vmatmul.bf16.gmra.mxu1 %v536_v13 }
  0x3f   :  { %227 = vmatmul.bf16.gmra.mxu2 %v538_v14  ;;  %237 = vmatmul.bf16.gmra.mxu3 %v540_v15 }
  0xab   :  { %v773_v16 = vpop.f32.mrf.mxu0  ;;  %v775_v17 = vpop.f32.mrf.mxu1 }
  0xac   :  { %v286_v27 = vmul.f32 %v773_v16, %v773_v16  ;;  %v290_v37 = vmul.f32 %v775_v17, %v775_v17 }
  0xb2   :  { %v779_v19 = vpop.f32.mrf.mxu2  ;;  %v785_v22 = vpop.f32.mrf.mxu3 }
  0xb3   :  { %v777_v18 = vpop.f32.mrf.mxu0  ;;  %v781_v20 = vpop.f32.mrf.mxu1  ;;  %v294_v51 = vmul.f32 %v779_v19, %v779_v19  ;;  %v298_v1 = vmul.f32 %v785_v22, %v785_v22 }
  0xb4   :  { %v287_v25 = vmul.f32 %v777_v18, %v777_v18  ;;  %v262_v28 = vadd.f32 %v777_v18, %v773_v16  ;;  %v291_v41 = vmul.f32 %v781_v20, %v781_v20 }
  0xb6   :  { %v302_v30 = vadd.f32 %v287_v25, %v286_v27 }
  0xba   :  { %v787_v23 = vpop.f32.mrf.mxu2  ;;  %v805_v36 = vpop.f32.mrf.mxu3 }
  0xbb   :  { %v783_v21 = vpop.f32.mrf.mxu0  ;;  %v791_v26 = vpop.f32.mrf.mxu1  ;;  %v295_v55 = vmul.f32 %v787_v23, %v787_v23  ;;  %v299_v4 = vmul.f32 %v805_v36, %v805_v36 }
  0xbc   :  { %v288_v29 = vmul.f32 %v783_v21, %v783_v21  ;;  %v263_v31 = vadd.f32 %v262_v28, %v783_v21  ;;  %v292_v45 = vmul.f32 %v791_v26, %v791_v26 }
  0xbe   :  { %v303_v33 = vadd.f32 %v302_v30, %v288_v29 }
  0xc2   :  { %v810_v40 = vpop.f32.mrf.mxu2  ;;  %v826_v54 = vpop.f32.mrf.mxu3 }
  0xc3   :  { %v800_v32 = vpop.f32.mrf.mxu0  ;;  %v815_v44 = vpop.f32.mrf.mxu1  ;;  %v296_v60 = vmul.f32 %v810_v40, %v810_v40  ;;  %v300_v9 = vmul.f32 %v826_v54, %v826_v54 }
  0xc4   :  { %v264_v34 = vadd.f32 %v263_v31, %v800_v32  ;;  %v289_v35 = vmul.f32 %v800_v32, %v800_v32  ;;  %v293_v49 = vmul.f32 %v815_v44, %v815_v44 }
  0xc6   :  { %v265_v38 = vadd.f32 %v264_v34, %v775_v17  ;;  %v304_v39 = vadd.f32 %v303_v33, %v289_v35  ;;  %v261_v34 = vld [vmem:[#allocation3] sm:$0x1] }
  0xc8   :  { %v305_v42 = vadd.f32 %v304_v39, %v290_v37  ;;  %v266_v43 = vadd.f32 %v265_v38, %v781_v20  ;;  %v285_v38 = vld [vmem:[#allocation4] sm:$0x1] }
  0xca   :  { %v267_v46 = vadd.f32 %v266_v43, %v791_v26  ;;  %v306_v47 = vadd.f32 %v305_v42, %v291_v41  ;;  %v831_v58 = vpop.f32.mrf.mxu2  ;;  %v240_v7 = vpop.f32.mrf.mxu3 }
  0xcb   :  { %v297_v0 = vmul.f32 %v831_v58, %v831_v58  ;;  %v301_v13 = vmul.f32 %v240_v7, %v240_v7 }
  0xcc   :  { %v268_v48 = vadd.f32 %v267_v46, %v815_v44  ;;  %v307_v50 = vadd.f32 %v306_v47, %v292_v45 }
  0xce   :  { %v269_v52 = vadd.f32 %v268_v48, %v779_v19  ;;  %v308_v53 = vadd.f32 %v307_v50, %v293_v49 }
  0xd0   :  { %v309_v56 = vadd.f32 %v308_v53, %v294_v51  ;;  %v270_v57 = vadd.f32 %v269_v52, %v787_v23 }
  0xd2   :  { %v271_v59 = vadd.f32 %v270_v57, %v810_v40  ;;  %v310_v61 = vadd.f32 %v309_v56, %v295_v55 }
  0xd4   :  { %v311_v62 = vadd.f32 %v310_v61, %v296_v60  ;;  %v272_v63 = vadd.f32 %v271_v59, %v831_v58  ;;  %v335_v59 = vld [vmem:[#allocation10] sm:$0x1] }
  0xd6   :  { %v273_v2 = vadd.f32 %v272_v63, %v785_v22  ;;  %v312_v3 = vadd.f32 %v311_v62, %v297_v0  ;;  %v348_v63 = vld [vmem:[#allocation10 + $0x1] sm:$0x1] }
  0xd8   :  { %v313_v5 = vadd.f32 %v312_v3, %v298_v1  ;;  %v274_v6 = vadd.f32 %v273_v2, %v805_v36 }
  0xda   :  { %v275_v8 = vadd.f32 %v274_v6, %v826_v54  ;;  %v314_v10 = vadd.f32 %v313_v5, %v299_v4 }
  0xdc   :  { %v315_v11 = vadd.f32 %v314_v10, %v300_v9  ;;  %v276_v12 = vadd.f32 %v275_v8, %v240_v7 }
  0xde   :  { %v277_v14 = vrot.slane %v276_v12, 4  ;;  %v316_v15 = vadd.f32 %v315_v11, %v301_v13 }
  0xe0   :  { %v278_v24 = vadd.f32 %v277_v14, %v276_v12  ;;  %v317_v25 = vrot.slane %v316_v15, 4 }
  0xe2   :  { %v279_v27 = vrot.slane %v278_v24, 2  ;;  %v318_v28 = vadd.f32 %v317_v25, %v316_v15 }
  0xe4   :  { %v280_v29 = vadd.f32 %v279_v27, %v278_v24  ;;  %v319_v30 = vrot.slane %v318_v28, 2 }
  0xe6   :  { %v281_v31 = vrot.slane %v280_v29, 1  ;;  %v320_v33 = vadd.f32 %v319_v30, %v318_v28 }
  0xe8   :  { %v282_v35 = vadd.f32 %v281_v31, %v280_v29  ;;  %v321_v37 = vrot.slane %v320_v33, 1 }
  0xea   :  { %v283_v39 = vadd.f32 %v282_v35, %v261_v34  ;;  %v322_v41 = vadd.f32 %v321_v37, %v320_v33 }
  0xec   :  { %284 = vst [vmem:[#allocation3] sm:$0x1] %v283_v39  ;;  %v323_v42 = vadd.f32 %v322_v41, %v285_v38 }
  0xee   :  { %324 = vst [vmem:[#allocation4] sm:$0x1] %v323_v42 }
  0xf3   :  { %v328_v43 = vld [vmem:[#allocation3] sm:$0x1] }
  0xf4   :  { %v329_v45 = vmul.f32 0.0078125, %v328_v43 }
  0xf5   :  { %v330_v46 = vld [vmem:[#allocation4] sm:$0x1] }
  0xf6   :  { %v331_v47 = vmul.f32 0.0078125, %v330_v46  ;;  %v332_v48 = vmul.f32 %v329_v45, %v329_v45 }
  0xf8   :  { %v333_v49 = vsub.f32 %v331_v47, %v332_v48 }
  0xfa   :  { %v334_v50 = vmax.f32 %v333_v49, 0.0 }
  0xfc   :  { %v336_v51 = vadd.f32 1e-05, %v334_v50 }
  0xfe   :  { %627 = vrsqrt.f32 %v336_v51  ;;  %vm343_vm1 = vweird.f32 %v336_v51 }
 0x104   :  { %v628_v52 = vpop.eup %627 }
 0x105   :  { %v338_v53 = vmul.f32 %v628_v52, %v336_v51  ;;  %vm344_vm0 = vweird.f32 %v628_v52 }
 0x106   :  { %vm345_vm2 = vmor %vm343_vm1, %vm344_vm0 }
 0x107   :  { %v339_v55 = vmul.f32 %v628_v52, %v338_v53 }
 0x109   :  { %v340_v56 = vmul.f32 0.5, %v339_v55 }
 0x10b   :  { %v341_v57 = vsub.f32 1.5, %v340_v56 }
 0x10d   :  { %v342_v60 = vmul.f32 %v628_v52, %v341_v57 }
 0x10f   :  { %v346_v61 = vsel %vm345_vm2, %v628_v52, %v342_v60 }
 0x110   :  { %v347_v62 = vmul.f32 %v346_v61, %v335_v59 }
 0x112   :  { %v349_v0 = vmul.f32 %v347_v62, %v329_v45  ;;  %v367_v1 = vperm.slane %v347_v62, 0 }
 0x114   :  { %v350_v2 = vsub.f32 %v348_v63, %v349_v0  ;;  %v382_v3 = vmul.f32 %v367_v1, %v826_v54  ;;  %v383_v4 = vmul.f32 %v367_v1, %v240_v7  ;;  %v368_v5 = vmul.f32 %v367_v1, %v773_v16 }
 0x115   :  { %v369_v6 = vmul.f32 %v367_v1, %v777_v18  ;;  %v370_v8 = vmul.f32 %v367_v1, %v783_v21  ;;  %v371_v9 = vmul.f32 %v367_v1, %v800_v32  ;;  %v372_v10 = vmul.f32 %v367_v1, %v775_v17 }
 0x116   :  { %v384_v11 = vperm.slane %v350_v2, 0  ;;  %v373_v12 = vmul.f32 %v367_v1, %v781_v20  ;;  %v374_v13 = vmul.f32 %v367_v1, %v791_v26  ;;  %v375_v14 = vmul.f32 %v367_v1, %v815_v44 }
 0x117   :  { %v376_v54 = vmul.f32 %v367_v1, %v779_v19  ;;  %v377_v7 = vmul.f32 %v367_v1, %v787_v23  ;;  %v378_v16 = vmul.f32 %v367_v1, %v810_v40  ;;  %v379_v18 = vmul.f32 %v367_v1, %v831_v58 }
 0x118   :  { %v399_v21 = vadd.f32 %v384_v11, %v382_v3  ;;  %v400_v15 = vadd.f32 %v384_v11, %v383_v4  ;;  %v380_v32 = vmul.f32 %v367_v1, %v785_v22  ;;  %v381_v17 = vmul.f32 %v367_v1, %v805_v36 }
 0x119   :  { %v385_v24 = vadd.f32 %v384_v11, %v368_v5  ;;  %v386_v20 = vadd.f32 %v384_v11, %v369_v6  ;;  %v387_v25 = vadd.f32 %v384_v11, %v370_v8  ;;  %v388_v26 = vadd.f32 %v384_v11, %v371_v9 }
 0x11a   :  { %v415_v27 = vmax.f32 %v399_v21, 0.0  ;;  %v416_v44 = vmax.f32 %v400_v15, 0.0  ;;  %v389_v28 = vadd.f32 %v384_v11, %v372_v10  ;;  %v390_v19 = vadd.f32 %v384_v11, %v373_v12 }
 0x11b   :  { %v391_v29 = vadd.f32 %v384_v11, %v374_v13  ;;  %v392_v23 = vadd.f32 %v384_v11, %v375_v14  ;;  %v393_v30 = vadd.f32 %v384_v11, %v376_v54  ;;  %v394_v40 = vadd.f32 %v384_v11, %v377_v7 }
 0x11c   :  { %v587_v31 = vpack.c.bf16 %v416_v44, %v415_v27  ;;  %v395_v58 = vadd.f32 %v384_v11, %v378_v16  ;;  %v396_v33 = vadd.f32 %v384_v11, %v379_v18  ;;  %v397_v34 = vadd.f32 %v384_v11, %v380_v32 }
 0x11d   :  { %v398_v35 = vadd.f32 %v384_v11, %v381_v17  ;;  %v401_v22 = vmax.f32 %v385_v24, 0.0  ;;  %v402_v37 = vmax.f32 %v386_v20, 0.0  ;;  %v403_v36 = vmax.f32 %v387_v25, 0.0 }
 0x11e   :  { %595 = vst [vmem:[#allocation11 + $0x38] sm:$0xff] %v587_v31   ;;  %v404_v38 = vmax.f32 %v388_v26, 0.0  ;;  %v405_v39 = vmax.f32 %v389_v28, 0.0  ;;  %v406_v41 = vmax.f32 %v390_v19, 0.0  ;;  %v407_v42 = vmax.f32 %v391_v29, 0.0 }
 0x11f   :  { %v408_v43 = vmax.f32 %v392_v23, 0.0  ;;  %v409_v45 = vmax.f32 %v393_v30, 0.0  ;;  %v410_v46 = vmax.f32 %v394_v40, 0.0  ;;  %v411_v47 = vmax.f32 %v395_v58, 0.0 }
 0x120   :  { %v412_v48 = vmax.f32 %v396_v33, 0.0  ;;  %v413_v49 = vmax.f32 %v397_v34, 0.0  ;;  %v414_v50 = vmax.f32 %v398_v35, 0.0  ;;  %v552_v51 = vpack.c.bf16 %v402_v37, %v401_v22 }
 0x121   :  { %v557_v52 = vpack.c.bf16 %v404_v38, %v403_v36  ;;  %v562_v53 = vpack.c.bf16 %v406_v41, %v405_v39  ;;  %v567_v55 = vpack.c.bf16 %v408_v43, %v407_v42  ;;  %v572_v56 = vpack.c.bf16 %v410_v46, %v409_v45 }
 0x122   :  { %553 = vst [vmem:[#allocation11] sm:$0xff] %v552_v51   ;;  %v577_v57 = vpack.c.bf16 %v412_v48, %v411_v47  ;;  %v582_v59 = vpack.c.bf16 %v414_v50, %v413_v49 }
 0x123   :  { %589 = vst [vmem:[#allocation11 + $0x8] sm:$0xff] %v557_v52  }
 0x124   :  { %590 = vst [vmem:[#allocation11 + $0x10] sm:$0xff] %v562_v53  }
 0x125   :  { %591 = vst [vmem:[#allocation11 + $0x18] sm:$0xff] %v567_v55  }
 0x126   :  { %592 = vst [vmem:[#allocation11 + $0x20] sm:$0xff] %v572_v56  }
 0x127   :  { %593 = vst [vmem:[#allocation11 + $0x28] sm:$0xff] %v577_v57  }
 0x128   :  { %594 = vst [vmem:[#allocation11 + $0x30] sm:$0xff] %v582_v59  }
 0x129   :  { %461 = dma.vmem_to_hbm [thread:$0]  %s454_s27, 1024, %s456_s30, [#allocation7], %s732_s20, %s732_s20, %s733_s21  }
 0x12a   :  { %729 = dma.done.wait [#allocation7], 1024  }
 0x12b   :  { %730 = vsyncadd [#allocation7], 4294966272 }
 0x12c   :  { %466 = vsyncpa [#allocation6], 1 }
 0x12d   :  { %467 = vsyncpa [#allocation9], 1 }
 0x12e   :  { %468 = vsyncpa [#allocation7], 1 }

</bundles_post_ra>
